<compile_context>
chip_gen: v7x
topology: tpu7x:2x2x1
jax: 0.10.0
libtpu: 0.0.40
codegen_flags: <defaults>
</compile_context>

<pallas_src>
import jax
import jax.numpy as jnp
import numpy as np
from jax.experimental import pallas as pl
from jax.experimental.pallas import tpu as pltpu


def _round_up(x, m):
    return (x + m - 1) // m * m


def _pick_batch_tile(N, max_tb=4096):
    """Batch tile: multiple of 8 (sublane aligned), even grid-step count (>=2)
    when N allows, capped at 4096 rows per step."""
    if N <= 8:
        return 8
    g = pl.cdiv(N, max_tb)
    g = max(2, g + (g % 2))            # even number of grid steps, >= 2 (v7x megacore)
    return max(8, _round_up(pl.cdiv(N, g), 8))


def _kf_obs_kernel(x_ref, ht_ref, o_ref):
    """One batch tile: (TB, dim_state) @ (dim_state, dim_obs) -> (TB, dim_obs).

    x_ref  : (TB, dim_state)       state rows for this tile
    ht_ref : (dim_state, dim_obs)  H^T (grid-invariant, stays resident in VMEM)
    o_ref  : (TB, dim_obs)         observation-prior block
    """
    # NOTE: default MXU precision is fine at these sizes (rtol 1e-5); pass
    # precision=jax.lax.Precision.HIGHEST here if bit-level f32 parity with the
    # PyTorch reference is required (free for this mem-bound kernel).
    o_ref[...] = jnp.dot(
        x_ref[...], ht_ref[...], preferred_element_type=jnp.float32
    ).astype(o_ref.dtype)


def _linear_kf_obs_prior(state2d, h_t, *, tb):
    """pallas_call wrapper: state2d (N, dim_state), h_t (dim_state, dim_obs)."""
    n, dim_state = state2d.shape
    dim_obs = h_t.shape[1]
    grid = (pl.cdiv(n, tb),)           # ragged last tile handled by Pallas clamping
    return pl.pallas_call(
        _kf_obs_kernel,
        out_shape=jax.ShapeDtypeStruct((n, dim_obs), state2d.dtype),
        grid=grid,
        in_specs=[
            pl.BlockSpec((tb, dim_state), lambda i: (i, 0)),
            pl.BlockSpec((dim_state, dim_obs), lambda i: (0, 0)),
        ],
        out_specs=pl.BlockSpec((tb, dim_obs), lambda i: (i, 0)),
        compiler_params=pltpu.CompilerParams(
            dimension_semantics=("parallel",),
            vmem_limit_bytes=32 * 1024 * 1024,   # headroom vs. v5e 16 MiB default
        ),
    )(state2d, h_t)


def linear_kf_measurement_forward(state, H, R, *, constant_noise, step=0):
    """Returns (obs_prior, jac[..., -1], R_expanded) exactly as the PyTorch module.

    state : (N, dim_state, 1)
    H     : (dim_obs, dim_state)
    R     : (dim_obs, dim_obs)            if constant_noise
            (T, N, dim_obs, dim_obs)      if not constant_noise (time-major)
    """
    N, dim_state, s_last = state.shape
    assert s_last == 1
    dim_obs = H.shape[0]
    assert H.shape == (dim_obs, dim_state)

    # --- hot path: batched H @ x on the MXU (Pallas kernel), no pad/slice passes ---
    x = state.reshape(N, dim_state)
    tb = _pick_batch_tile(N)
    obs2d = _linear_kf_obs_prior(x, jnp.transpose(H), tb=tb)
    obs_prior = obs2d.reshape(N, dim_obs, 1)

    # --- jac / R are pure broadcasts / time-slices: leave to XLA so they can fuse
    #     into the consumer (they dominate HBM bytes; don't burn kernel stores) ---
    jac = jnp.broadcast_to(H[None], (N, dim_obs, dim_state))
    if constant_noise:
        assert R.shape == (dim_obs, dim_obs)
        r_out = jnp.broadcast_to(R, (N, dim_obs, dim_obs))
    else:
        assert R.ndim == 4 and R.shape[1:] == (N, dim_obs, dim_obs)
        # traced dynamic index -> single compiled graph under jit, step can be traced
        r_out = jax.lax.dynamic_index_in_dim(
            R, jnp.asarray(step, jnp.int32), axis=0, keepdims=False
        )
    return obs_prior, jac, r_out


class LinearKalmanFilterMeasurementModelPallas:
    """Mirror of the PyTorch module; the H @ state hot path runs in the Pallas kernel."""

    def __init__(self, dim_state, dim_obs, constant_noise=False):
        self.dim_state = dim_state
        self.dim_obs = dim_obs
        self.constant_noise = constant_noise
        self.initialized_matrices = False

    def initialize_matrices(self, H, R):
        self.H = H
        if R.ndim > 3:
            assert not self.constant_noise
            assert R.shape[1:3] == (self.dim_obs, self.dim_obs)
            # store time-major once: (N, do, do, T) -> (T, N, do, do)
            self.R = jnp.moveaxis(R, -1, 0)
            self._T = self.R.shape[0]
            self._step = 0
        else:
            assert self.constant_noise
            assert R.shape == (self.dim_obs, self.dim_obs)
            self.R = R
        self.initialized_matrices = True

    def forward(self, *, state):
        assert self.initialized_matrices
        N, dim_state, _ = state.shape
        assert dim_state == self.dim_state
        step = 0
        if not self.constant_noise:
            assert self._step < self._T, "filter stepped past the end of the R sequence"
            step = self._step
            self._step += 1   # TODO(synk): thread step explicitly if forward() is jitted
        return linear_kf_measurement_forward(
            state, self.H, self.R, constant_noise=self.constant_noise, step=step
        )


if __name__ == "__main__":
    dim_state, dim_obs, T = 32, 16, 8
    key = jax.random.PRNGKey(0)
    k_state, k_state2, k_h, k_rc, k_rs = jax.random.split(key, 5)

    H = jax.random.normal(k_h, (dim_obs, dim_state), dtype=jnp.float32)

    # constant-noise covariance (PSD-ish, deterministic)
    A = jax.random.normal(k_rc, (dim_obs, dim_obs), dtype=jnp.float32)
    R_const = A @ A.T / dim_obs + jnp.eye(dim_obs, dtype=jnp.float32)

    # --- constant_noise=True path, N=2 (single padded/clamped tile) ---
    N = 2
    state = jax.random.normal(k_state, (N, dim_state, 1), dtype=jnp.float32)
    model_c = LinearKalmanFilterMeasurementModelPallas(dim_state, dim_obs, constant_noise=True)
    model_c.initialize_matrices(H, R_const)
    obs_c, jac_c, r_c = model_c.forward(state=state)
    jax.block_until_ready((obs_c, jac_c, r_c))

    obs_ref = jnp.einsum("od,nds->nos", H, state)
    jac_ref = jnp.broadcast_to(H[None], (N, dim_obs, dim_state))
    np.testing.assert_allclose(np.asarray(obs_c), np.asarray(obs_ref), rtol=1e-5, atol=1e-5)
    np.testing.assert_allclose(np.asarray(jac_c), np.asarray(jac_ref), rtol=1e-6, atol=1e-6)
    np.testing.assert_allclose(
        np.asarray(r_c),
        np.broadcast_to(np.asarray(R_const)[None], (N, dim_obs, dim_obs)),
        rtol=1e-6, atol=1e-6)

    # --- constant_noise=True path, N=20 (multi-step grid with ragged last tile) ---
    N_big = 20
    state_big = jax.random.normal(k_state2, (N_big, dim_state, 1), dtype=jnp.float32)
    obs_b, jac_b, r_b = model_c.forward(state=state_big)
    jax.block_until_ready((obs_b, jac_b, r_b))
    obs_big_ref = jnp.einsum("od,nds->nos", H, state_big)
    np.testing.assert_allclose(np.asarray(obs_b), np.asarray(obs_big_ref), rtol=1e-5, atol=1e-5)
    np.testing.assert_allclose(
        np.asarray(jac_b),
        np.broadcast_to(np.asarray(H)[None], (N_big, dim_obs, dim_state)),
        rtol=1e-6, atol=1e-6)

    # --- constant_noise=False path (steps 0 and 1), N=2 ---
    B = jax.random.normal(k_rs, (N, dim_obs, dim_obs, T), dtype=jnp.float32)
    R_seq = B + jnp.eye(dim_obs, dtype=jnp.float32)[None, :, :, None]
    model_v = LinearKalmanFilterMeasurementModelPallas(dim_state, dim_obs, constant_noise=False)
    model_v.initialize_matrices(H, R_seq)
    obs_v0, jac_v0, r_v0 = model_v.forward(state=state)
    obs_v1, jac_v1, r_v1 = model_v.forward(state=state)
    jax.block_until_ready((obs_v0, r_v0, obs_v1, r_v1))

    np.testing.assert_allclose(np.asarray(obs_v0), np.asarray(obs_ref), rtol=1e-5, atol=1e-5)
    np.testing.assert_allclose(np.asarray(jac_v0), np.asarray(jac_ref), rtol=1e-6, atol=1e-6)
    np.testing.assert_allclose(np.asarray(r_v0), np.asarray(R_seq[..., 0]), rtol=1e-6, atol=1e-6)
    np.testing.assert_allclose(np.asarray(obs_v1), np.asarray(obs_ref), rtol=1e-5, atol=1e-5)
    np.testing.assert_allclose(np.asarray(r_v1), np.asarray(R_seq[..., 1]), rtol=1e-6, atol=1e-6)

    print("KERNEL_OK")
</pallas_src>

<mosaic_0001>
module attributes {stable_mosaic.version = 11 : i64} {
  func.func @_kf_obs_kernel(%arg0: i32, %arg1: memref<8x32xf32, #tpu.memory_space<vmem>>, %arg2: memref<32x16xf32, #tpu.memory_space<vmem>>, %arg3: memref<8x16xf32, #tpu.memory_space<vmem>>) attributes {dimension_semantics = [#tpu.dimension_semantics<parallel>], iteration_bounds = array<i64: 1>, scalar_prefetch = 0 : i64, scratch_operands = 0 : i64, tpu.core_type = #tpu.core_type<tc>, window_params = [{transform_indices = @transform_0, window_bounds = array<i64: 8, 32>}, {pipeline_mode = #tpu.pipeline_mode<synchronous>, transform_indices = @transform_1, window_bounds = array<i64: 32, 16>}, {transform_indices = @transform_2, window_bounds = array<i64: 8, 16>}]} {
    %c0 = arith.constant 0 : index
    %c0_0 = arith.constant 0 : index
    %0 = vector.load %arg1[%c0, %c0_0] : memref<8x32xf32, #tpu.memory_space<vmem>>, vector<8x32xf32>
    %c0_1 = arith.constant 0 : index
    %c0_2 = arith.constant 0 : index
    %1 = vector.load %arg2[%c0_1, %c0_2] : memref<32x16xf32, #tpu.memory_space<vmem>>, vector<32x16xf32>
    %cst = arith.constant dense<0.000000e+00> : vector<8x16xf32>
    %2 = tpu.matmul %0, %1, %cst {dimension_numbers = #tpu.dot_dimension_numbers<[1], [0], [0], [1], [0, 0, 1, 1], [], []>} : vector<8x32xf32>, vector<32x16xf32>, vector<8x16xf32> -> vector<8x16xf32>
    %c0_3 = arith.constant 0 : index
    %c0_4 = arith.constant 0 : index
    %3 = vector.load %arg3[%c0_3, %c0_4] : memref<8x16xf32, #tpu.memory_space<vmem>>, vector<8x16xf32>
    tpu.vector_store %arg3[%c0_3, %c0_4], %2 {strides = array<i32>} : memref<8x16xf32, #tpu.memory_space<vmem>>, vector<8x16xf32>,
    return
  }
  func.func @transform_0(%arg0: i32) -> (i32, i32) {
    %c0_i32 = arith.constant 0 : i32
    %c0_i32_0 = arith.constant 0 : i32
    return %arg0, %c0_i32 : i32, i32
  }
  func.func @transform_1(%arg0: i32) -> (i32, i32) {
    %c0_i32 = arith.constant 0 : i32
    %c0_i32_0 = arith.constant 0 : i32
    %c0_i32_1 = arith.constant 0 : i32
    return %c0_i32, %c0_i32_0 : i32, i32
  }
  func.func @transform_2(%arg0: i32) -> (i32, i32) {
    %c0_i32 = arith.constant 0 : i32
    %c0_i32_0 = arith.constant 0 : i32
    return %arg0, %c0_i32 : i32, i32
  }
}

</mosaic_0001>

<bundles_post_ra>
// kernel: tpu_custom_call.1
= control target key start
LH: loop header
LB: loop body
LE: loop exit
PB: predicated region body
PF: predicated region fallthrough
CT: control target
= control target key end

     0   :  { %7 = vsyncpa [#allocation3], 0  ;;  %v162_v2 = vmov 0.0|0.0   ;;  %vm163_vm0 = vmmov 0   ;;  %v164_v6 = vmov 0.0   ;;  %vm17_vm1 = vcmask 261120   ;;  %s210_s0 = inlined_call_operand.vmem [shape: f32[2,32], index: 0, kind: input, shape index: {}]   ;;  %s211_s1 = inlined_call_operand.vmem [shape: f32[32,16], index: 1, kind: input, shape index: {}]   ;;  %s212_s2 = inlined_call_operand.hbm [shape: f32[2,16], index: 2, kind: output, shape index: {}]  }
   0x1   :  { %v13_v0 = vld [vmem:[%s211_s1] sm:$0xff]  ;;  %v14_v1 = vld [vmem:[%s211_s1 + $0x8] sm:$0xff]  ;;  %126 = vmatprep.subr.bf16.mxu0 %v162_v2  ;;  %v15_v4 = vld [vmem:[%s211_s1 + $0x10] sm:$0xff]  ;;  %123 = vmatprep.mubr.msk.f32.mxu0 %vm163_vm0, %v164_v6  ;;  %vm91_vm2 = vcmask 130048  }
   0x2   :  { %v127_v3 = vpack.c.bf16 %v14_v1, %v13_v0  ;;  %v16_v5 = vld [vmem:[%s211_s1 + $0x18] sm:$0xff]  ;;  %v12_v8 = vld [vmem:[%s210_s0] sm:$0xff] }
   0x3   :  { %v130_v7 = vpack.c.bf16 %v16_v5, %v15_v4 }
   0x4   :  { %128 = vmatpush3.bf16.msra.mxu0 %v127_v3 }
   0x5   :  { %129 = vmatprep.subr.bf16.mxu0 %v162_v2 }
   0x8   :  { %131 = vmatpush3.bf16.msra.mxu0 %v130_v7 }
   0xb   :  { %124 = vmatmul.mubr.msk.f32.vlgmr.msra.gmra.mrb[0].mxu0 %vm17_vm1, %v12_v8 }
  0xde   :  { %v87_v9 = vpop.f32.mrb[0].mxu0 }
  0xdf   :  { %92 = vst.msk [vmem:[#allocation2] sm:$0xff] %vm91_vm2, %v87_v9  ;;  %v125_v10 = vpop.f32.mrb[1].mxu0 }
  0xe0   :  { %97 = vsyncadd [#allocation3], 96  ;;  %s165_s19 = smov [#allocation2]  }
  0xe1   :  { %s98_s1 = sshll.u32 %s165_s19, 4  ;;  %s99_s1 = int_to_ptr.vmem [resolvable:$true] %s98_s1 }
  0xe2   :  { %s138_s20 = scalar_lea.vmem %s99_s1, 32  ;;  %s142_s21 = scalar_lea.vmem %s99_s1, 128 }
  0xe3   :  { %p139_p0 = scmp.ne.s32.totalorder %s99_s1, %s138_s20  ;;  %p143_p1 = scmp.lt.s32.totalorder %s99_s1, %s99_s1 }
  0xe4   :  { %p144_p2 = scmp.lt.s32.totalorder %s142_s21, %s138_s20 }
  0xe6   :  { %p145_p3 = por %p144_p2, %p143_p1 }
  0xe8   :  { %p146_p4 = pnand %p145_p3, %p139_p0 }
  0xea   :  { %149 = shalt.err (!%p146_p4)
}
  0xeb   :  { %s150_s23 = scalar_lea.hbm %s212_s2, 32 }
  0xec   :  { %p151_p5 = scmp.ne.s32.totalorder %s212_s2, %s150_s23  ;;  %p154_p6 = scmp.lt.u32.totalorder %s150_s23, %s212_s2 }
  0xee   :  { %p156_p7 = pnand %p154_p6, %p151_p5 }
  0xf0   :  { %159 = shalt.err (!%p156_p7)
}
  0xf1   :  { %s166_s28 = smov 32   ;;  %s167_s29 = smov 2  }
  0xf2   :  { %104 = dma.vmem_to_hbm [thread:$0]  %s99_s1, 32, %s212_s2, [#allocation3], %s166_s28, %s166_s28, %s167_s29  }
  0xf3   :  { %160 = dma.done.wait [#allocation3], 128  }
  0xf4   :  { %161 = vsyncadd [#allocation3], 4294967168 }
  0xf5   :  { %108 = vsyncpa [#allocation3], 1 }

</bundles_post_ra>
